<compile_context>
chip_gen: v7x
topology: tpu7x:2x2x1
jax: 0.10.0
libtpu: 0.0.40
codegen_flags: <defaults>
</compile_context>

<pallas_src>
import functools

import jax
import jax.numpy as jnp
from jax.experimental import pallas as pl
from jax.experimental.pallas import tpu as pltpu

NEG_BIG = -1e30   # softmax-neutral fill for padded tagset lanes
LANE = 128
S_TILE = 128      # MXU M-rows per grid step (use 256 on v6e/v7x at scale)


def _round_up(x, m):
    return ((x + m - 1) // m) * m


# ---------------------------------------------------------------------------
# Fused kernel: grid over S tiles ("parallel" — no cross-step state).
#   lstm   = tanh(emb_tile @ proj)                       (bf16 MXU, f32 acc)
#   logits = lstm @ W_all + b_all                        (one wide matmul, all heads)
#   out    = per-head log_softmax over 128-wide lane slices
# ---------------------------------------------------------------------------
def _mtl_fused_kernel(emb_ref, proj_ref, w_ref, b_ref, o_ref, *, n_heads, t_pad):
    # Base-model projection for THIS S-tile only (padded E/H are exact zeros).
    lstm = jnp.tanh(jnp.dot(emb_ref[...], proj_ref[...],
                            preferred_element_type=jnp.float32))        # (S_TILE, H_pad) f32

    # One wide MXU matmul over all heads at once (lane dim = n_heads * t_pad).
    logits = jnp.dot(lstm.astype(w_ref.dtype), w_ref[...],
                     preferred_element_type=jnp.float32) + b_ref[...]   # (S_TILE, N*T_pad) f32

    # Per-head numerically-stable log_softmax on aligned 128-wide lane slices.
    # Padded lanes carry bias = -1e30 -> exp underflows to 0, reductions correct.
    parts = []
    for n in range(n_heads):                 # static, small
        z = logits[:, n * t_pad:(n + 1) * t_pad]
        m = jnp.max(z, axis=-1, keepdims=True)
        z = z - m
        lse = jnp.log(jnp.sum(jnp.exp(z), axis=-1, keepdims=True))
        parts.append(z - lse)

    # Single lane-dense (N*T_pad wide) store.
    o_ref[...] = jnp.concatenate(parts, axis=-1)


def mtl_forward_fused(emb_padded, proj, w_all, b_all, *, n_heads, t_pad):
    """emb_padded: (S_pad, E_pad) bf16   (S_pad multiple of S_TILE)
       proj:       (E_pad, H_pad) bf16
       w_all:      (H_pad, N*T_pad) bf16 (heads concatenated along lanes)
       b_all:      (1, N*T_pad) f32     (padded lanes = -1e30)
       returns     (S_pad, N*T_pad) f32 log-probabilities (padded)."""
    S_pad, E_pad = emb_padded.shape
    H_pad = proj.shape[1]
    NT = w_all.shape[1]
    assert S_pad % S_TILE == 0
    grid = (S_pad // S_TILE,)

    cost = pl.CostEstimate(
        flops=2 * S_pad * E_pad * H_pad + 2 * S_pad * H_pad * NT,
        transcendentals=S_pad * H_pad + S_pad * NT,          # tanh + exp
        bytes_accessed=(emb_padded.size * emb_padded.dtype.itemsize
                        + proj.size * proj.dtype.itemsize
                        + w_all.size * w_all.dtype.itemsize
                        + b_all.size * b_all.dtype.itemsize
                        + S_pad * NT * 4),
    )

    kernel = functools.partial(_mtl_fused_kernel, n_heads=n_heads, t_pad=t_pad)

    return pl.pallas_call(
        kernel,
        out_shape=jax.ShapeDtypeStruct((S_pad, NT), jnp.float32),
        grid_spec=pltpu.PrefetchScalarGridSpec(
            num_scalar_prefetch=0,
            grid=grid,
            in_specs=[
                pl.BlockSpec((S_TILE, E_pad), lambda i: (i, 0)),  # emb S-tile
                pl.BlockSpec((E_pad, H_pad), lambda i: (0, 0)),   # shared projection
                pl.BlockSpec((H_pad, NT), lambda i: (0, 0)),      # all heads' W
                pl.BlockSpec((1, NT), lambda i: (0, 0)),          # all heads' bias
            ],
            out_specs=pl.BlockSpec((S_TILE, NT), lambda i: (i, 0)),
        ),
        compiler_params=pltpu.CompilerParams(
            # S-tiles are independent -> shard across v7x's 2 TCs; no effect on v5e/v6e.
            dimension_semantics=("parallel",),
            # Raise above v5e's 16 MiB default; re-derive against 64 MiB on v7x at scale.
            vmem_limit_bytes=32 * 1024 * 1024,
        ),
        cost_estimate=cost,
    )(emb_padded, proj, w_all, b_all)


# ---------------------------------------------------------------------------
# MTLWrapper (JAX)
# ---------------------------------------------------------------------------
class MTLWrapperJAX:
    def __init__(self, word_embedding_dim, hidden_dim, vocab_size,
                 tagset_sizes, directions=1, seed=0):
        self.hidden = hidden_dim * directions
        self.tagset_sizes = list(tagset_sizes)
        self.n_heads = len(self.tagset_sizes)
        self.t_pad = _round_up(max(self.tagset_sizes), LANE)   # per-head lane slab
        self.e_pad = _round_up(word_embedding_dim, LANE)       # lane-dense contraction dims
        self.h_pad = _round_up(self.hidden, LANE)

        key = jax.random.PRNGKey(seed)
        k_emb, k_proj, *k_heads = jax.random.split(key, 2 + 2 * self.n_heads)

        # Synthetic base-model params (stand-in for CharCNNTagger), zero-padded
        # to lane-dense shapes and cast to bf16 MXU operands. Padding is exact:
        # padded emb/proj entries are 0 (tanh(0)=0) and padded W rows are 0.
        emb_tbl = 0.1 * jax.random.normal(
            k_emb, (vocab_size, word_embedding_dim), dtype=jnp.float32)
        proj = 0.1 * jax.random.normal(
            k_proj, (word_embedding_dim, self.hidden), dtype=jnp.float32)
        self.embedding = jnp.pad(
            emb_tbl, ((0, 0), (0, self.e_pad - word_embedding_dim))).astype(jnp.bfloat16)
        self.proj = jnp.pad(
            proj, ((0, self.e_pad - word_embedding_dim),
                   (0, self.h_pad - self.hidden))).astype(jnp.bfloat16)

        # Per-task Linear heads (torch layout (T, H) / (T,)), then transposed,
        # padded, and concatenated along lanes into one (H_pad, N*T_pad) weight
        # and one (1, N*T_pad) bias (padded lanes = -1e30, softmax-neutral).
        self.heads = []
        w_cols, b_cols = [], []
        for i, tsz in enumerate(self.tagset_sizes):
            kw, kb = k_heads[2 * i], k_heads[2 * i + 1]
            bound = 1.0 / float(self.hidden) ** 0.5
            W = jax.random.uniform(kw, (tsz, self.hidden),
                                   minval=-bound, maxval=bound, dtype=jnp.float32)
            bvec = jax.random.uniform(kb, (tsz,),
                                      minval=-bound, maxval=bound, dtype=jnp.float32)
            self.heads.append((W, bvec))

            w_pad = jnp.zeros((self.h_pad, self.t_pad), jnp.float32)
            w_pad = w_pad.at[:self.hidden, :tsz].set(W.T)
            b_pad = jnp.full((self.t_pad,), NEG_BIG, jnp.float32)
            b_pad = b_pad.at[:tsz].set(bvec)
            w_cols.append(w_pad)
            b_cols.append(b_pad)

        self.w_all = jnp.concatenate(w_cols, axis=1).astype(jnp.bfloat16)  # (H_pad, N*T_pad)
        self.b_all = jnp.concatenate(b_cols, axis=0)[None, :]              # (1, N*T_pad) f32

        # One compiled executable for gather + pad + fused kernel + slicing.
        self._forward_jit = jax.jit(self._forward_impl)

    # -- base model stand-in (pure JAX, mirrors kernel dtypes; reference only)
    def base_model_forward(self, sentence):
        emb = self.embedding[sentence]                               # (S, E_pad) bf16
        return jnp.tanh(jnp.dot(emb, self.proj,
                                preferred_element_type=jnp.float32))  # (S, H_pad) f32

    # -- jitted forward -------------------------------------------------------
    def _forward_impl(self, sentence):
        S = sentence.shape[0]
        S_pad = _round_up(max(S, 1), S_TILE)
        emb = self.embedding[sentence]                               # (S, E_pad) bf16
        emb = jnp.pad(emb, ((0, S_pad - S), (0, 0)))                 # (S_pad, E_pad)
        out = mtl_forward_fused(emb, self.proj, self.w_all, self.b_all,
                                n_heads=self.n_heads, t_pad=self.t_pad)
        # Only [:S, :tagset_size] of each head slab is valid (padding invariant).
        return [out[:S, i * self.t_pad: i * self.t_pad + t]
                for i, t in enumerate(self.tagset_sizes)]

    def forward(self, sentence):
        return self._forward_jit(sentence)


# ---------------------------------------------------------------------------
if __name__ == "__main__":
    word_embedding_dim = 16
    hidden_dim = 32
    directions = 1
    vocab_size = 50
    tagset_sizes = [16, 24]
    seq_len = 8

    model = MTLWrapperJAX(word_embedding_dim, hidden_dim, vocab_size,
                          tagset_sizes, directions=directions, seed=0)

    key = jax.random.PRNGKey(0)
    sentence = jax.random.randint(key, (seq_len,), 0, vocab_size, dtype=jnp.int32)

    scores = model.forward(sentence)
    scores = [jax.block_until_ready(s) for s in scores]

    # Pure-JAX reference mirroring the kernel's bf16-operand / f32-accum math.
    lstm = model.base_model_forward(sentence)                        # (S, H_pad) f32
    ok = True
    for i, ((W, bvec), s, tsz) in enumerate(zip(model.heads, scores, tagset_sizes)):
        w_slab = model.w_all[:, i * model.t_pad: i * model.t_pad + tsz]   # (H_pad, tsz) bf16
        logits = jnp.dot(lstm.astype(jnp.bfloat16), w_slab,
                         preferred_element_type=jnp.float32) + bvec
        ref = jax.nn.log_softmax(logits, axis=-1)
        ok &= s.shape == (seq_len, tsz)
        ok &= bool(jnp.allclose(s, ref, atol=2e-2))
        ok &= bool(jnp.allclose(jnp.sum(jnp.exp(s), axis=-1), 1.0, atol=1e-3))

    print("KERNEL_OK" if ok else "MISMATCH")
</pallas_src>

<mosaic_0001>
module attributes {stable_mosaic.version = 11 : i64} {
  func.func @_mtl_fused_kernel(%arg0: i32, %arg1: memref<128x128xbf16, #tpu.memory_space<vmem>>, %arg2: memref<128x128xbf16, #tpu.memory_space<vmem>>, %arg3: memref<128x256xbf16, #tpu.memory_space<vmem>>, %arg4: memref<1x256xf32, #tpu.memory_space<vmem>>, %arg5: memref<128x256xf32, #tpu.memory_space<vmem>>) attributes {dimension_semantics = [#tpu.dimension_semantics<parallel>], iteration_bounds = array<i64: 1>, scalar_prefetch = 0 : i64, scratch_operands = 0 : i64, tpu.core_type = #tpu.core_type<tc>, window_params = [{transform_indices = @transform_0, window_bounds = array<i64: 128, 128>}, {pipeline_mode = #tpu.pipeline_mode<synchronous>, transform_indices = @transform_1, window_bounds = array<i64: 128, 128>}, {pipeline_mode = #tpu.pipeline_mode<synchronous>, transform_indices = @transform_2, window_bounds = array<i64: 128, 256>}, {pipeline_mode = #tpu.pipeline_mode<synchronous>, transform_indices = @transform_3, window_bounds = array<i64: 1, 256>}, {transform_indices = @transform_4, window_bounds = array<i64: 128, 256>}]} {
    %c0 = arith.constant 0 : index
    %c0_0 = arith.constant 0 : index
    %0 = vector.load %arg1[%c0, %c0_0] : memref<128x128xbf16, #tpu.memory_space<vmem>>, vector<128x128xbf16>
    %c0_1 = arith.constant 0 : index
    %c0_2 = arith.constant 0 : index
    %1 = vector.load %arg2[%c0_1, %c0_2] : memref<128x128xbf16, #tpu.memory_space<vmem>>, vector<128x128xbf16>
    %cst = arith.constant dense<0.000000e+00> : vector<128x128xf32>
    %2 = tpu.matmul %0, %1, %cst {dimension_numbers = #tpu.dot_dimension_numbers<[1], [0], [0], [1], [0, 0, 1, 1], [], []>} : vector<128x128xbf16>, vector<128x128xbf16>, vector<128x128xf32> -> vector<128x128xf32>
    %3 = math.tanh %2 : vector<128x128xf32>
    %4 = arith.truncf %3 : vector<128x128xf32> to vector<128x128xbf16>
    %c0_3 = arith.constant 0 : index
    %c0_4 = arith.constant 0 : index
    %5 = vector.load %arg3[%c0_3, %c0_4] : memref<128x256xbf16, #tpu.memory_space<vmem>>, vector<128x256xbf16>
    %cst_5 = arith.constant dense<0.000000e+00> : vector<128x256xf32>
    %6 = tpu.matmul %4, %5, %cst_5 {dimension_numbers = #tpu.dot_dimension_numbers<[1], [0], [0], [1], [0, 0, 1, 1], [], []>} : vector<128x128xbf16>, vector<128x256xbf16>, vector<128x256xf32> -> vector<128x256xf32>
    %c0_6 = arith.constant 0 : index
    %c0_7 = arith.constant 0 : index
    %7 = vector.load %arg4[%c0_6, %c0_7] : memref<1x256xf32, #tpu.memory_space<vmem>>, vector<1x256xf32>
    %8 = vector.broadcast %7 : vector<1x256xf32> to vector<128x256xf32>
    %9 = arith.addf %6, %8 : vector<128x256xf32>
    %10 = vector.extract_strided_slice %9 {offsets = [0, 0], sizes = [128, 128], strides = [1, 1]} : vector<128x256xf32> to vector<128x128xf32>
    %cst_8 = arith.constant dense<0xFF800000> : vector<128xf32>
    %11 = vector.multi_reduction <maximumf>, %10, %cst_8 [1] : vector<128x128xf32> to vector<128xf32>
    %12 = vector.shape_cast %11 : vector<128xf32> to vector<128x1xf32>
    %13 = vector.broadcast %12 : vector<128x1xf32> to vector<128x128xf32>
    %14 = arith.subf %10, %13 : vector<128x128xf32>
    %15 = math.exp %14 : vector<128x128xf32>
    %cst_9 = arith.constant dense<0.000000e+00> : vector<128xf32>
    %16 = vector.multi_reduction <add>, %15, %cst_9 [1] : vector<128x128xf32> to vector<128xf32>
    %17 = vector.shape_cast %16 : vector<128xf32> to vector<128x1xf32>
    %18 = math.log %17 : vector<128x1xf32>
    %19 = vector.broadcast %18 : vector<128x1xf32> to vector<128x128xf32>
    %20 = arith.subf %14, %19 : vector<128x128xf32>
    %21 = vector.extract_strided_slice %9 {offsets = [0, 128], sizes = [128, 128], strides = [1, 1]} : vector<128x256xf32> to vector<128x128xf32>
    %cst_10 = arith.constant dense<0xFF800000> : vector<128xf32>
    %22 = vector.multi_reduction <maximumf>, %21, %cst_10 [1] : vector<128x128xf32> to vector<128xf32>
    %23 = vector.shape_cast %22 : vector<128xf32> to vector<128x1xf32>
    %24 = vector.broadcast %23 : vector<128x1xf32> to vector<128x128xf32>
    %25 = arith.subf %21, %24 : vector<128x128xf32>
    %26 = math.exp %25 : vector<128x128xf32>
    %cst_11 = arith.constant dense<0.000000e+00> : vector<128xf32>
    %27 = vector.multi_reduction <add>, %26, %cst_11 [1] : vector<128x128xf32> to vector<128xf32>
    %28 = vector.shape_cast %27 : vector<128xf32> to vector<128x1xf32>
    %29 = math.log %28 : vector<128x1xf32>
    %30 = vector.broadcast %29 : vector<128x1xf32> to vector<128x128xf32>
    %31 = arith.subf %25, %30 : vector<128x128xf32>
    %32 = tpu.concatenate %20, %31 in 1 : vector<128x128xf32>, vector<128x128xf32> -> vector<128x256xf32>
    %c0_12 = arith.constant 0 : index
    %c0_13 = arith.constant 0 : index
    %33 = vector.load %arg5[%c0_12, %c0_13] : memref<128x256xf32, #tpu.memory_space<vmem>>, vector<128x256xf32>
    tpu.vector_store %arg5[%c0_12, %c0_13], %32 {strides = array<i32>} : memref<128x256xf32, #tpu.memory_space<vmem>>, vector<128x256xf32>,
    return
  }
  func.func @transform_0(%arg0: i32) -> (i32, i32) {
    %c0_i32 = arith.constant 0 : i32
    %c0_i32_0 = arith.constant 0 : i32
    return %arg0, %c0_i32 : i32, i32
  }
  func.func @transform_1(%arg0: i32) -> (i32, i32) {
    %c0_i32 = arith.constant 0 : i32
    %c0_i32_0 = arith.constant 0 : i32
    %c0_i32_1 = arith.constant 0 : i32
    return %c0_i32, %c0_i32_0 : i32, i32
  }
  func.func @transform_2(%arg0: i32) -> (i32, i32) {
    %c0_i32 = arith.constant 0 : i32
    %c0_i32_0 = arith.constant 0 : i32
    %c0_i32_1 = arith.constant 0 : i32
    return %c0_i32, %c0_i32_0 : i32, i32
  }
  func.func @transform_3(%arg0: i32) -> (i32, i32) {
    %c0_i32 = arith.constant 0 : i32
    %c0_i32_0 = arith.constant 0 : i32
    %c0_i32_1 = arith.constant 0 : i32
    return %c0_i32, %c0_i32_0 : i32, i32
  }
  func.func @transform_4(%arg0: i32) -> (i32, i32) {
    %c0_i32 = arith.constant 0 : i32
    %c0_i32_0 = arith.constant 0 : i32
    return %arg0, %c0_i32 : i32, i32
  }
}

</mosaic_0001>

<bundles_post_ra>
// kernel: _forward_impl.1
= control target key start
LH: loop header
LB: loop body
LE: loop exit
PB: predicated region body
PF: predicated region fallthrough
CT: control target
= control target key end

     0   :  { %v1141_v32 = vmov 0   ;;  %s1662_s1 = inlined_call_operand.vmem [shape: bf16[128,128], index: 1, kind: input, shape index: {}]   ;;  %s1663_s0 = inlined_call_operand.vmem [shape: bf16[128,128], index: 0, kind: input, shape index: {}]   ;;  %s1664_s2 = inlined_call_operand.vmem [shape: bf16[128,256], index: 2, kind: input, shape index: {}]   ;;  %s1665_s3 = inlined_call_operand.vmem [shape: f32[1,256], index: 3, kind: input, shape index: {}]   ;;  %s1666_s4 = inlined_call_operand.vmem [shape: f32[128,256], index: 4, kind: output, shape index: {}]  }
   0x1   :  { %v941_v0 = vld [vmem:[%s1662_s1] sm:$0xff]   ;;  %v942_v1 = vld [vmem:[%s1662_s1 + $0x8] sm:$0xff]   ;;  %v943_v2 = vld [vmem:[%s1662_s1 + $0x10] sm:$0xff]   ;;  %427 = vmatprep.mubr.bf16.mxu1 %v1141_v32 }
   0x2   :  { %892 = vmatprep.subr.bf16.mxu0 %v941_v0  ;;  %v944_v3 = vld [vmem:[%s1662_s1 + $0x18] sm:$0xff]   ;;  %v949_v4 = vld [vmem:[%s1663_s0] sm:$0xff]   ;;  %v946_v6 = vld [vmem:[%s1662_s1 + $0x28] sm:$0xff]  }
   0x3   :  { %893 = vmatpush3.bf16.msra.mxu0 %v941_v0  ;;  %908 = vmatprep.mubr.bf16.mxu0 %v949_v4  ;;  %v945_v5 = vld [vmem:[%s1662_s1 + $0x20] sm:$0xff]   ;;  %v947_v9 = vld [vmem:[%s1662_s1 + $0x30] sm:$0xff]   ;;  %v948_v13 = vld [vmem:[%s1662_s1 + $0x38] sm:$0xff]  }
   0x4   :  { %894 = vmatprep.subr.bf16.mxu0 %v942_v1  ;;  %v959_v7 = vld [vmem:[%s1664_s2 + $0x4] ss:$8 sps:$4 sm:$0xff]   ;;  %v957_v8 = vld [vmem:[%s1664_s2] ss:$8 sps:$4 sm:$0xff]   ;;  %v962_v10 = vld [vmem:[%s1664_s2 + $0x14] ss:$8 sps:$4 sm:$0xff]  }
   0x5   :  { %924 = vmatprep.subr.bf16.mxu1 %v959_v7  ;;  %v960_v11 = vld [vmem:[%s1664_s2 + $0x10] ss:$8 sps:$4 sm:$0xff]   ;;  %v965_v12 = vld [vmem:[%s1664_s2 + $0x24] ss:$8 sps:$4 sm:$0xff]   ;;  %v963_v14 = vld [vmem:[%s1664_s2 + $0x20] ss:$8 sps:$4 sm:$0xff]  }
   0x6   :  { %932 = vmatpush1.bf16.msra.mxu1 %v957_v8  ;;  %v968_v15 = vld [vmem:[%s1664_s2 + $0x34] ss:$8 sps:$4 sm:$0xff]   ;;  %v950_v16 = vld [vmem:[%s1663_s0 + $0x8] sm:$0xff]   ;;  %v966_v17 = vld [vmem:[%s1664_s2 + $0x30] ss:$8 sps:$4 sm:$0xff]  }
   0x7   :  { %895 = vmatpush3.bf16.msra.mxu0 %v942_v1  ;;  %925 = vmatprep.subr.bf16.mxu1 %v962_v10  ;;  %v951_v18 = vld [vmem:[%s1663_s0 + $0x10] sm:$0xff]   ;;  %v952_v19 = vld [vmem:[%s1663_s0 + $0x18] sm:$0xff]   ;;  %v953_v20 = vld [vmem:[%s1663_s0 + $0x20] sm:$0xff]  }
   0x8   :  { %896 = vmatprep.subr.bf16.mxu0 %v943_v2  ;;  %v954_v21 = vld [vmem:[%s1663_s0 + $0x28] sm:$0xff]   ;;  %v955_v22 = vld [vmem:[%s1663_s0 + $0x30] sm:$0xff]   ;;  %v956_v23 = vld [vmem:[%s1663_s0 + $0x38] sm:$0xff]  }
   0x9   :  { %v971_v24 = vld [vmem:[%s1664_s2 + $0x44] ss:$8 sps:$4 sm:$0xff]   ;;  %v969_v25 = vld [vmem:[%s1664_s2 + $0x40] ss:$8 sps:$4 sm:$0xff]   ;;  %v974_v26 = vld [vmem:[%s1664_s2 + $0x54] ss:$8 sps:$4 sm:$0xff]  }
   0xa   :  { %933 = vmatpush1.bf16.msra.mxu1 %v960_v11  ;;  %v972_v27 = vld [vmem:[%s1664_s2 + $0x50] ss:$8 sps:$4 sm:$0xff]   ;;  %v977_v28 = vld [vmem:[%s1664_s2 + $0x64] ss:$8 sps:$4 sm:$0xff]   ;;  %v975_v29 = vld [vmem:[%s1664_s2 + $0x60] ss:$8 sps:$4 sm:$0xff]  }
   0xb   :  { %897 = vmatpush3.bf16.msra.mxu0 %v943_v2  ;;  %926 = vmatprep.subr.bf16.mxu1 %v965_v12  ;;  %v980_v30 = vld [vmem:[%s1664_s2 + $0x74] ss:$8 sps:$4 sm:$0xff]   ;;  %v978_v31 = vld [vmem:[%s1664_s2 + $0x70] ss:$8 sps:$4 sm:$0xff]  }
   0xc   :  { %898 = vmatprep.subr.bf16.mxu0 %v944_v3 }
   0xe   :  { %934 = vmatpush1.bf16.msra.mxu1 %v963_v14 }
   0xf   :  { %899 = vmatpush3.bf16.msra.mxu0 %v944_v3  ;;  %927 = vmatprep.subr.bf16.mxu1 %v968_v15 }
  0x10   :  { %900 = vmatprep.subr.bf16.mxu0 %v945_v5 }
  0x12   :  { %935 = vmatpush1.bf16.msra.mxu1 %v966_v17 }
  0x13   :  { %901 = vmatpush3.bf16.msra.mxu0 %v945_v5  ;;  %928 = vmatprep.subr.bf16.mxu1 %v971_v24 }
  0x14   :  { %902 = vmatprep.subr.bf16.mxu0 %v946_v6 }
  0x16   :  { %936 = vmatpush1.bf16.msra.mxu1 %v969_v25 }
  0x17   :  { %903 = vmatpush3.bf16.msra.mxu0 %v946_v6  ;;  %929 = vmatprep.subr.bf16.mxu1 %v974_v26 }
  0x18   :  { %904 = vmatprep.subr.bf16.mxu0 %v947_v9 }
  0x1a   :  { %937 = vmatpush1.bf16.msra.mxu1 %v972_v27 }
  0x1b   :  { %905 = vmatpush3.bf16.msra.mxu0 %v947_v9  ;;  %930 = vmatprep.subr.bf16.mxu1 %v977_v28  ;;  %v285_v9 = vlaneseq }
  0x1c   :  { %906 = vmatprep.subr.bf16.mxu0 %v948_v13 }
  0x1e   :  { %938 = vmatpush1.bf16.msra.mxu1 %v975_v29 }
  0x1f   :  { %907 = vmatpush3.bf16.msra.mxu0 %v948_v13  ;;  %931 = vmatprep.subr.bf16.mxu1 %v980_v30 }
  0x20   :  { %375 = vmatprep.subr.bf16.mxu0 %v959_v7 }
  0x22   :  { %909 = vmatmul.mubr.bf16.vlgmr.msra.gmra.mrb[0].mxu0 %v950_v16  ;;  %939 = vmatpush1.bf16.msra.mxu1 %v978_v31 }
  0x23   :  { %912 = vmatprep.mubr.bf16.mxu0 %v951_v18  ;;  %376 = vmatpush1.bf16.msra.mxu0 %v957_v8 }
  0x24   :  { %377 = vmatprep.subr.bf16.mxu0 %v962_v10  ;;  %v286_v10 = vshrl.u32 %v285_v9, 7 }
  0x27   :  { %378 = vmatpush1.bf16.msra.mxu0 %v960_v11  ;;  %v287_v11 = vsub.s32 0, %v286_v10 }
  0x28   :  { %379 = vmatprep.subr.bf16.mxu0 %v965_v12  ;;  %v283_v12 = vld [vmem:[%s1665_s3] sm:$0x3] }
  0x29   :  { %v1274_v13 = vrot.slane %v283_v12, %v287_v11 }
  0x2a   :  { %913 = vmatmul.mubr.bf16.gmra.mrb[4].mxu0 %v952_v19 }
  0x2b   :  { %916 = vmatprep.mubr.bf16.mxu0 %v953_v20  ;;  %380 = vmatpush1.bf16.msra.mxu0 %v963_v14  ;;  %v291_v14 = vsub.s32 1, %v286_v10 }
  0x2c   :  { %381 = vmatprep.subr.bf16.mxu0 %v968_v15 }
  0x2f   :  { %382 = vmatpush1.bf16.msra.mxu0 %v966_v17  ;;  %v1279_v17 = vrot.slane %v283_v12, %v291_v14 }
  0x30   :  { %383 = vmatprep.subr.bf16.mxu0 %v971_v24 }
  0x32   :  { %917 = vmatmul.mubr.bf16.gmra.mrb[8].mxu0 %v954_v21 }
  0x33   :  { %920 = vmatprep.mubr.bf16.mxu0 %v955_v22  ;;  %384 = vmatpush1.bf16.msra.mxu0 %v969_v25 }
  0x34   :  { %385 = vmatprep.subr.bf16.mxu0 %v974_v26 }
  0x37   :  { %386 = vmatpush1.bf16.msra.mxu0 %v972_v27 }
  0x38   :  { %387 = vmatprep.subr.bf16.mxu0 %v977_v28 }
  0x3a   :  { %921 = vmatmul.mubr.bf16.gmra.mrb[12].mxu0 %v956_v23 }
  0x3b   :  { %388 = vmatpush1.bf16.msra.mxu0 %v975_v29  ;;  %407 = vmatprep.mubr.bf16.mxu0 %v1141_v32 }
  0x3c   :  { %389 = vmatprep.subr.bf16.mxu0 %v980_v30 }
  0x3f   :  { %390 = vmatpush1.bf16.msra.mxu0 %v978_v31 }
  0xf5   :  { %v910_v33 = vpop.f32.mrb[0].mxu0 }
  0xf6   :  { %981 = vtanh.f32 %v910_v33  ;;  %v180_v34 = vpop.f32.mrb[1].mxu0 }
  0xf7   :  { %983 = vtanh.f32 %v180_v34  ;;  %v911_v35 = vpop.f32.mrb[2].mxu0 }
  0xf8   :  { %985 = vtanh.f32 %v911_v35  ;;  %v183_v36 = vpop.f32.mrb[3].mxu0 }
  0xf9   :  { %987 = vtanh.f32 %v183_v36 }
  0xfd   :  { %v914_v37 = vpop.f32.mrb[4].mxu0 }
  0xfe   :  { %989 = vtanh.f32 %v914_v37  ;;  %v196_v38 = vpop.f32.mrb[5].mxu0 }
  0xff   :  { %991 = vtanh.f32 %v196_v38  ;;  %v915_v39 = vpop.f32.mrb[6].mxu0 }
 0x100   :  { %v982_v40 = vpop.eup %981  ;;  %993 = vtanh.f32 %v915_v39  ;;  %v199_v41 = vpop.f32.mrb[7].mxu0 }
 0x101   :  { %v984_v42 = vpop.eup %983  ;;  %995 = vtanh.f32 %v199_v41 }
 0x102   :  { %v986_v43 = vpop.eup %985 }
 0x103   :  { %v988_v44 = vpop.eup %987  ;;  %v260_v45 = vpack.c.bf16 %v986_v43, %v982_v40 }
 0x104   :  { %v259_v46 = vpack.c.bf16 %v988_v44, %v984_v42 }
 0x105   :  { %v918_v47 = vpop.f32.mrb[8].mxu0 }
 0x106   :  { %408 = vmatmul.mubr.bf16.vlgmr.msra.gmra.mrb[16].mxu0 %v259_v46  ;;  %997 = vtanh.f32 %v918_v47  ;;  %v212_v48 = vpop.f32.mrb[9].mxu0 }
 0x107   :  { %417 = vmatprep.mubr.bf16.mxu0 %v1141_v32  ;;  %999 = vtanh.f32 %v212_v48  ;;  %v919_v49 = vpop.f32.mrb[10].mxu0 }
 0x108   :  { %v990_v50 = vpop.eup %989  ;;  %1001 = vtanh.f32 %v919_v49  ;;  %v215_v51 = vpop.f32.mrb[11].mxu0 }
 0x109   :  { %v992_v52 = vpop.eup %991  ;;  %1003 = vtanh.f32 %v215_v51 }
 0x10a   :  { %v994_v53 = vpop.eup %993 }
 0x10b   :  { %v996_v54 = vpop.eup %995  ;;  %v262_v55 = vpack.c.bf16 %v994_v53, %v990_v50 }
 0x10c   :  { %v261_v56 = vpack.c.bf16 %v996_v54, %v992_v52 }
 0x10d   :  { %v922_v57 = vpop.f32.mrb[12].mxu0 }
 0x10e   :  { %418 = vmatmul.mubr.bf16.gmra.mrb[20].mxu0 %v260_v45  ;;  %428 = vmatmul.mubr.bf16.vlgmr.msra.gmra.mrb[0].mxu1 %v261_v56  ;;  %1005 = vtanh.f32 %v922_v57  ;;  %v228_v58 = vpop.f32.mrb[13].mxu0 }
 0x10f   :  { %437 = vmatprep.mubr.bf16.mxu1 %v1141_v32  ;;  %1007 = vtanh.f32 %v228_v58  ;;  %v923_v59 = vpop.f32.mrb[14].mxu0 }
 0x110   :  { %v998_v60 = vpop.eup %997  ;;  %1009 = vtanh.f32 %v923_v59  ;;  %v231_v61 = vpop.f32.mrb[15].mxu0 }
 0x111   :  { %v1000_v62 = vpop.eup %999  ;;  %1011 = vtanh.f32 %v231_v61 }
 0x112   :  { %v1002_v63 = vpop.eup %1001 }
 0x113   :  { %v1004_v0 = vpop.eup %1003  ;;  %v264_v1 = vpack.c.bf16 %v1002_v63, %v998_v60 }
 0x114   :  { %v263_v2 = vpack.c.bf16 %v1004_v0, %v1000_v62 }
 0x116   :  { %438 = vmatmul.mubr.bf16.gmra.mrb[4].mxu1 %v262_v55 }
 0x117   :  { %447 = vmatprep.mubr.bf16.mxu1 %v1141_v32 }
 0x118   :  { %v1006_v3 = vpop.eup %1005 }
 0x119   :  { %v1008_v4 = vpop.eup %1007 }
 0x11a   :  { %v1010_v5 = vpop.eup %1009 }
 0x11b   :  { %v1012_v6 = vpop.eup %1011  ;;  %v266_v7 = vpack.c.bf16 %v1010_v5, %v1006_v3 }
 0x11c   :  { %v265_v8 = vpack.c.bf16 %v1012_v6, %v1008_v4 }
 0x11e   :  { %448 = vmatmul.mubr.bf16.gmra.mrb[8].mxu1 %v263_v2 }
 0x11f   :  { %457 = vmatprep.mubr.bf16.mxu1 %v1141_v32 }
 0x126   :  { %458 = vmatmul.mubr.bf16.gmra.mrb[12].mxu1 %v264_v1 }
 0x127   :  { %467 = vmatprep.mubr.bf16.mxu1 %v1141_v32 }
 0x12e   :  { %468 = vmatmul.mubr.bf16.gmra.mrb[16].mxu1 %v265_v8 }
 0x12f   :  { %477 = vmatprep.mubr.bf16.mxu1 %v1141_v32 }
 0x136   :  { %478 = vmatmul.mubr.bf16.gmra.mrb[20].mxu1 %v266_v7 }
 0x1d9   :  { %v409_v15 = vpop.f32.mrb[16].mxu0 }
 0x1da   :  { %v1277_v16 = vadd.f32 %v409_v15, %v1274_v13  ;;  %v411_v18 = vpop.f32.mrb[17].mxu0 }
 0x1db   :  { %v413_v19 = vpop.f32.mrb[18].mxu0  ;;  %v1286_v22 = vadd.f32 %v411_v18, %v1279_v17 }
 0x1dc   :  { %v415_v20 = vpop.f32.mrb[19].mxu0  ;;  %488 = vmax.xlane.f32.xlu0 %v1277_v16  ;;  %v1291_v25 = vadd.f32 %v413_v19, %v1274_v13 }
 0x1dd   :  { %v1283_v21 = vadd.f32 %v415_v20, %v1279_v17 }
 0x1df   :  { %650 = vmax.xlane.f32.xlu1 %v1283_v21 }
 0x1e0   :  { %648 = vmax.xlane.f32.xlu0 %v1286_v22 }
 0x1e1   :  { %v419_v23 = vpop.f32.mrb[20].mxu0  ;;  %v429_v24 = vpop.f32.mrb[0].mxu1 }
 0x1e2   :  { %v1294_v26 = vadd.f32 %v419_v23, %v1274_v13  ;;  %v421_v27 = vpop.f32.mrb[21].mxu0  ;;  %v431_v28 = vpop.f32.mrb[1].mxu1  ;;  %v1299_v32 = vadd.f32 %v429_v24, %v1274_v13 }
 0x1e3   :  { %v423_v29 = vpop.f32.mrb[22].mxu0  ;;  %v433_v30 = vpop.f32.mrb[2].mxu1  ;;  %v1310_v37 = vadd.f32 %v421_v27, %v1279_v17  ;;  %v1318_v42 = vadd.f32 %v431_v28, %v1279_v17 }
 0x1e4   :  { %v425_v31 = vpop.f32.mrb[23].mxu0  ;;  %492 = vmax.xlane.f32.xlu1 %v1294_v26  ;;  %490 = vmax.xlane.f32.xlu0 %v1291_v25  ;;  %v435_v33 = vpop.f32.mrb[3].mxu1  ;;  %v1302_v34 = vadd.f32 %v423_v29, %v1274_v13  ;;  %v1305_v35 = vadd.f32 %v433_v30, %v1274_v13 }
 0x1e5   :  { %v1315_v41 = vadd.f32 %v425_v31, %v1279_v17  ;;  %v1323_v44 = vadd.f32 %v435_v33, %v1279_v17 }
 0x1e8   :  { %494 = vmax.xlane.f32.xlu1 %v1302_v34  ;;  %496 = vmax.xlane.f32.xlu0 %v1299_v32 }
 0x1e9   :  { %v439_v36 = vpop.f32.mrb[4].mxu1 }
 0x1ea   :  { %v441_v38 = vpop.f32.mrb[5].mxu1  ;;  %v1326_v45 = vadd.f32 %v439_v36, %v1274_v13 }
 0x1eb   :  { %v443_v39 = vpop.f32.mrb[6].mxu1  ;;  %v1331_v49 = vadd.f32 %v441_v38, %v1279_v17 }
 0x1ec   :  { %v445_v40 = vpop.f32.mrb[7].mxu1  ;;  %498 = vmax.xlane.f32.xlu1 %v1305_v35  ;;  %652 = vmax.xlane.f32.xlu0 %v1310_v37  ;;  %v1334_v50 = vadd.f32 %v443_v39, %v1274_v13 }
 0x1ed   :  { %v1342_v53 = vadd.f32 %v445_v40, %v1279_v17 }
 0x1f0   :  { %654 = vmax.xlane.f32.xlu1 %v1315_v41  ;;  %656 = vmax.xlane.f32.xlu0 %v1318_v42 }
 0x1f1   :  { %v449_v43 = vpop.f32.mrb[8].mxu1 }
 0x1f2   :  { %v451_v46 = vpop.f32.mrb[9].mxu1  ;;  %v1337_v51 = vadd.f32 %v449_v43, %v1274_v13 }
 0x1f3   :  { %v453_v47 = vpop.f32.mrb[10].mxu1  ;;  %v1345_v56 = vadd.f32 %v451_v46, %v1279_v17 }
 0x1f4   :  { %658 = vmax.xlane.f32.xlu1 %v1323_v44  ;;  %500 = vmax.xlane.f32.xlu0 %v1326_v45  ;;  %v455_v48 = vpop.f32.mrb[11].mxu1  ;;  %v1348_v57 = vadd.f32 %v453_v47, %v1274_v13 }
 0x1f5   :  { %v1355_v60 = vadd.f32 %v455_v48, %v1279_v17 }
 0x1f8   :  { %502 = vmax.xlane.f32.xlu1 %v1334_v50  ;;  %660 = vmax.xlane.f32.xlu0 %v1331_v49 }
 0x1f9   :  { %v459_v52 = vpop.f32.mrb[12].mxu1 }
 0x1fa   :  { %v461_v54 = vpop.f32.mrb[13].mxu1  ;;  %v1358_v61 = vadd.f32 %v459_v52, %v1274_v13 }
 0x1fb   :  { %v463_v55 = vpop.f32.mrb[14].mxu1  ;;  %v1363_v1 = vadd.f32 %v461_v54, %v1279_v17 }
 0x1fc   :  { %v465_v58 = vpop.f32.mrb[15].mxu1  ;;  %662 = vmax.xlane.f32.xlu1 %v1342_v53  ;;  %504 = vmax.xlane.f32.xlu0 %v1337_v51  ;;  %v1366_v2 = vadd.f32 %v463_v55, %v1274_v13 }
 0x1fd   :  { %v1374_v5 = vadd.f32 %v465_v58, %v1279_v17 }
 0x200   :  { %506 = vmax.xlane.f32.xlu1 %v1348_v57  ;;  %664 = vmax.xlane.f32.xlu0 %v1345_v56 }
 0x201   :  { %v469_v59 = vpop.f32.mrb[16].mxu1 }
 0x202   :  { %v471_v62 = vpop.f32.mrb[17].mxu1  ;;  %v1369_v3 = vadd.f32 %v469_v59, %v1274_v13 }
 0x203   :  { %v473_v63 = vpop.f32.mrb[18].mxu1  ;;  %v1377_v8 = vadd.f32 %v471_v62, %v1279_v17 }
 0x204   :  { %666 = vmax.xlane.f32.xlu1 %v1355_v60  ;;  %508 = vmax.xlane.f32.xlu0 %v1358_v61  ;;  %v475_v0 = vpop.f32.mrb[19].mxu1  ;;  %v1380_v9 = vadd.f32 %v473_v63, %v1274_v13 }
 0x205   :  { %v1387_v11 = vadd.f32 %v475_v0, %v1279_v17 }
 0x208   :  { %510 = vmax.xlane.f32.xlu1 %v1366_v2  ;;  %668 = vmax.xlane.f32.xlu0 %v1363_v1 }
 0x209   :  { %v479_v4 = vpop.f32.mrb[20].mxu1 }
 0x20a   :  { %v481_v6 = vpop.f32.mrb[21].mxu1  ;;  %v1390_v12 = vadd.f32 %v479_v4, %v1274_v13 }
 0x20b   :  { %v483_v7 = vpop.f32.mrb[22].mxu1  ;;  %v1395_v14 = vadd.f32 %v481_v6, %v1279_v17 }
 0x20c   :  { %670 = vmax.xlane.f32.xlu1 %v1374_v5  ;;  %v485_v10 = vpop.f32.mrb[23].mxu1  ;;  %512 = vmax.xlane.f32.xlu0 %v1369_v3  ;;  %v1398_v15 = vadd.f32 %v483_v7, %v1274_v13 }
 0x20d   :  { %v1403_v18 = vadd.f32 %v485_v10, %v1279_v17 }
 0x210   :  { %514 = vmax.xlane.f32.xlu1 %v1380_v9  ;;  %672 = vmax.xlane.f32.xlu0 %v1377_v8 }
 0x214   :  { %674 = vmax.xlane.f32.xlu1 %v1387_v11  ;;  %516 = vmax.xlane.f32.xlu0 %v1390_v12 }
 0x218   :  { %518 = vmax.xlane.f32.xlu1 %v1398_v15  ;;  %676 = vmax.xlane.f32.xlu0 %v1395_v14 }
 0x21c   :  { %678 = vmax.xlane.f32.xlu1 %v1403_v18 }
 0x269   :  { %v489_v19 = vpop.xlane.xlu0 %488 }
 0x26a   :  { %v1407_v20 = vsub.f32 %v1277_v16, %v489_v19 }
 0x26c   :  { %v536_v23 = vmul.f32 1.442695, %v1407_v20  ;;  %v651_v24 = vpop.xlane.xlu1 %650 }
 0x26d   :  { %v649_v27 = vpop.xlane.xlu0 %648  ;;  %v1415_v17 = vsub.f32 %v1283_v21, %v651_v24 }
 0x26e   :  { %1013 = vpow2.f32 %v536_v23  ;;  %v1411_v13 = vsub.f32 %v1286_v22, %v649_v27 }
 0x26f   :  { %v698_v39 = vmul.f32 1.442695, %v1415_v17 }
 0x270   :  { %v696_v28 = vmul.f32 1.442695, %v1411_v13 }
 0x271   :  { %v493_v29 = vpop.xlane.xlu1 %492  ;;  %v491_v30 = vpop.xlane.xlu0 %490 }
 0x272   :  { %1015 = vpow2.f32 %v696_v28  ;;  %v1418_v31 = vsub.f32 %v1294_v26, %v493_v29  ;;  %v1421_v16 = vsub.f32 %v1291_v25, %v491_v30 }
 0x274   :  { %v540_v33 = vmul.f32 1.442695, %v1418_v31  ;;  %v538_v36 = vmul.f32 1.442695, %v1421_v16 }
 0x275   :  { %v495_v22 = vpop.xlane.xlu1 %494  ;;  %v497_v38 = vpop.xlane.xlu0 %496 }
 0x276   :  { %1017 = vpow2.f32 %v540_v33  ;;  %v1427_v40 = vsub.f32 %v1302_v34, %v495_v22  ;;  %v1430_v21 = vsub.f32 %v1299_v32, %v497_v38 }
 0x277   :  { %1019 = vpow2.f32 %v538_v36 }
 0x278   :  { %v1014_v26 = vpop.eup %1013  ;;  %v544_v25 = vmul.f32 1.442695, %v1430_v21  ;;  %1021 = vpow2.f32 %v698_v39  ;;  %v542_v47 = vmul.f32 1.442695, %v1427_v40 }
 0x279   :  { %v499_v43 = vpop.xlane.xlu1 %498  ;;  %v653_v46 = vpop.xlane.xlu0 %652  ;;  %568 = vadd.xlane.f32.xlu0 %v1014_v26 }
 0x27a   :  { %v1435_v48 = vsub.f32 %v1305_v35, %v499_v43  ;;  %v1438_v52 = vsub.f32 %v1310_v37, %v653_v46  ;;  %1023 = vpow2.f32 %v544_v25 }
 0x27b   :  { %1025 = vpow2.f32 %v542_v47 }
 0x27c   :  { %v1016_v34 = vpop.eup %1015  ;;  %v700_v32 = vmul.f32 1.442695, %v1438_v52  ;;  %v546_v58 = vmul.f32 1.442695, %v1435_v48 }
 0x27d   :  { %v655_v54 = vpop.xlane.xlu1 %654  ;;  %v657_v55 = vpop.xlane.xlu0 %656  ;;  %728 = vadd.xlane.f32.xlu0 %v1016_v34 }
 0x27e   :  { %v1443_v59 = vsub.f32 %v1315_v41, %v655_v54  ;;  %v1446_v62 = vsub.f32 %v1318_v42, %v657_v55  ;;  %1027 = vpow2.f32 %v700_v32 }
 0x27f   :  { %1029 = vpow2.f32 %v546_v58 }
 0x280   :  { %v1018_v35 = vpop.eup %1017  ;;  %v704_v37 = vmul.f32 1.442695, %v1446_v62  ;;  %v702_v6 = vmul.f32 1.442695, %v1443_v59 }
 0x281   :  { %v1020_v63 = vpop.eup %1019  ;;  %v659_v0 = vpop.xlane.xlu1 %658  ;;  %572 = vadd.xlane.f32.xlu0 %v1018_v35 }
 0x282   :  { %v501_v4 = vpop.xlane.xlu0 %500  ;;  %v1451_v7 = vsub.f32 %v1323_v44, %v659_v0  ;;  %570 = vadd.xlane.f32.xlu1 %v1020_v63  ;;  %1031 = vpow2.f32 %v704_v37  ;;  %v1022_v42 = vpop.eup %1021 }
 0x283   :  { %v1454_v41 = vsub.f32 %v1326_v45, %v501_v4  ;;  %1033 = vpow2.f32 %v702_v6 }
 0x284   :  { %v1024_v19 = vpop.eup %1023  ;;  %v706_v27 = vmul.f32 1.442695, %v1451_v7 }
 0x285   :  { %v548_v10 = vmul.f32 1.442695, %v1454_v41  ;;  %v503_v23 = vpop.xlane.xlu1 %502  ;;  %576 = vadd.xlane.f32.xlu0 %v1024_v19  ;;  %v1026_v45 = vpop.eup %1025 }
 0x286   :  { %v661_v24 = vpop.xlane.xlu0 %660  ;;  %v1459_v28 = vsub.f32 %v1334_v50, %v503_v23  ;;  %730 = vadd.xlane.f32.xlu1 %v1022_v42 }
 0x287   :  { %v1462_v44 = vsub.f32 %v1331_v49, %v661_v24  ;;  %1035 = vpow2.f32 %v548_v10 }
 0x288   :  { %v1028_v30 = vpop.eup %1027  ;;  %1037 = vpow2.f32 %v706_v27  ;;  %v550_v22 = vmul.f32 1.442695, %v1459_v28 }
 0x289   :  { %v708_v29 = vmul.f32 1.442695, %v1462_v44  ;;  %v663_v33 = vpop.xlane.xlu1 %662  ;;  %732 = vadd.xlane.f32.xlu0 %v1028_v30  ;;  %v1030_v49 = vpop.eup %1029 }
 0x28a   :  { %v505_v36 = vpop.xlane.xlu0 %504  ;;  %v1467_v38 = vsub.f32 %v1342_v53, %v663_v33  ;;  %574 = vadd.xlane.f32.xlu1 %v1026_v45 }
 0x28b   :  { %v1470_v50 = vsub.f32 %v1337_v51, %v505_v36  ;;  %1039 = vpow2.f32 %v708_v29 }
 0x28c   :  { %v1032_v26 = vpop.eup %1031  ;;  %1041 = vpow2.f32 %v550_v22  ;;  %v710_v46 = vmul.f32 1.442695, %v1467_v38 }
 0x28d   :  { %v552_v39 = vmul.f32 1.442695, %v1470_v50  ;;  %v507_v25 = vpop.xlane.xlu1 %506  ;;  %736 = vadd.xlane.f32.xlu0 %v1032_v26  ;;  %v1034_v51 = vpop.eup %1033 }
 0x28e   :  { %v665_v43 = vpop.xlane.xlu0 %664  ;;  %v1475_v47 = vsub.f32 %v1348_v57, %v507_v25  ;;  %578 = vadd.xlane.f32.xlu1 %v1030_v49 }
 0x28f   :  { %v1478_v53 = vsub.f32 %v1345_v56, %v665_v43  ;;  %1043 = vpow2.f32 %v552_v39 }
 0x290   :  { %1045 = vpow2.f32 %v710_v46  ;;  %v554_v58 = vmul.f32 1.442695, %v1475_v47 }
 0x291   :  { %v712_v34 = vmul.f32 1.442695, %v1478_v53  ;;  %v1036_v32 = vpop.eup %1035  ;;  %v667_v54 = vpop.xlane.xlu1 %666 }
 0x292   :  { %v509_v55 = vpop.xlane.xlu0 %508  ;;  %v1483_v35 = vsub.f32 %v1355_v60, %v667_v54  ;;  %734 = vadd.xlane.f32.xlu1 %v1034_v51  ;;  %580 = vadd.xlane.f32.xlu0 %v1036_v32  ;;  %v1038_v56 = vpop.eup %1037 }
 0x293   :  { %v1486_v57 = vsub.f32 %v1358_v61, %v509_v55  ;;  %1047 = vpow2.f32 %v712_v34 }
 0x294   :  { %1049 = vpow2.f32 %v554_v58  ;;  %v714_v6 = vmul.f32 1.442695, %v1483_v35 }
 0x295   :  { %v556_v37 = vmul.f32 1.442695, %v1486_v57  ;;  %v1040_v63 = vpop.eup %1039  ;;  %v511_v0 = vpop.xlane.xlu1 %510 }
 0x296   :  { %v669_v4 = vpop.xlane.xlu0 %668  ;;  %v1491_v42 = vsub.f32 %v1366_v2, %v511_v0  ;;  %738 = vadd.xlane.f32.xlu1 %v1038_v56  ;;  %740 = vadd.xlane.f32.xlu0 %v1040_v63  ;;  %v1042_v61 = vpop.eup %1041 }
 0x297   :  { %v1494_v60 = vsub.f32 %v1363_v1, %v669_v4  ;;  %1051 = vpow2.f32 %v556_v37 }
 0x298   :  { %1053 = vpow2.f32 %v714_v6  ;;  %v558_v27 = vmul.f32 1.442695, %v1491_v42 }
 0x299   :  { %v716_v10 = vmul.f32 1.442695, %v1494_v60  ;;  %v1044_v19 = vpop.eup %1043  ;;  %v671_v23 = vpop.xlane.xlu1 %670 }
 0x29a   :  { %v513_v24 = vpop.xlane.xlu0 %512  ;;  %v1499_v45 = vsub.f32 %v1374_v5, %v671_v23  ;;  %582 = vadd.xlane.f32.xlu1 %v1042_v61  ;;  %584 = vadd.xlane.f32.xlu0 %v1044_v19  ;;  %v1046_v2 = vpop.eup %1045 }
 0x29b   :  { %v1502_v1 = vsub.f32 %v1369_v3, %v513_v24  ;;  %1055 = vpow2.f32 %v716_v10 }
 0x29c   :  { %1057 = vpow2.f32 %v558_v27  ;;  %v718_v22 = vmul.f32 1.442695, %v1499_v45 }
 0x29d   :  { %v560_v29 = vmul.f32 1.442695, %v1502_v1  ;;  %v1048_v30 = vpop.eup %1047  ;;  %v515_v33 = vpop.xlane.xlu1 %514 }
 0x29e   :  { %v673_v36 = vpop.xlane.xlu0 %672  ;;  %742 = vadd.xlane.f32.xlu1 %v1046_v2  ;;  %v1507_v49 = vsub.f32 %v1380_v9, %v515_v33  ;;  %744 = vadd.xlane.f32.xlu0 %v1048_v30  ;;  %v1050_v3 = vpop.eup %1049 }
 0x29f   :  { %v1510_v5 = vsub.f32 %v1377_v8, %v673_v36  ;;  %1059 = vpow2.f32 %v560_v29 }
 0x2a0   :  { %1061 = vpow2.f32 %v718_v22  ;;  %v562_v46 = vmul.f32 1.442695, %v1507_v49 }
 0x2a1   :  { %v720_v39 = vmul.f32 1.442695, %v1510_v5  ;;  %v1052_v26 = vpop.eup %1051  ;;  %v675_v25 = vpop.xlane.xlu1 %674 }
 0x2a2   :  { %v517_v43 = vpop.xlane.xlu0 %516  ;;  %586 = vadd.xlane.f32.xlu1 %v1050_v3  ;;  %v1515_v51 = vsub.f32 %v1387_v11, %v675_v25  ;;  %588 = vadd.xlane.f32.xlu0 %v1052_v26  ;;  %v1054_v8 = vpop.eup %1053 }
 0x2a3   :  { %v1518_v9 = vsub.f32 %v1390_v12, %v517_v43  ;;  %1063 = vpow2.f32 %v720_v39 }
 0x2a4   :  { %1065 = vpow2.f32 %v562_v46  ;;  %v722_v58 = vmul.f32 1.442695, %v1515_v51 }
 0x2a5   :  { %v564_v34 = vmul.f32 1.442695, %v1518_v9  ;;  %v1056_v32 = vpop.eup %1055  ;;  %v519_v54 = vpop.xlane.xlu1 %518 }
 0x2a6   :  { %v677_v55 = vpop.xlane.xlu0 %676  ;;  %746 = vadd.xlane.f32.xlu1 %v1054_v8  ;;  %748 = vadd.xlane.f32.xlu0 %v1056_v32  ;;  %v1526_v11 = vsub.f32 %v1398_v15, %v519_v54  ;;  %v1058_v12 = vpop.eup %1057 }
 0x2a7   :  { %v1523_v56 = vsub.f32 %v1395_v14, %v677_v55  ;;  %1067 = vpow2.f32 %v564_v34 }
 0x2a8   :  { %1069 = vpow2.f32 %v722_v58  ;;  %v566_v4 = vmul.f32 1.442695, %v1526_v11 }
 0x2a9   :  { %v724_v37 = vmul.f32 1.442695, %v1523_v56  ;;  %v1060_v63 = vpop.eup %1059  ;;  %v679_v0 = vpop.xlane.xlu1 %678 }
 0x2aa   :  { %590 = vadd.xlane.f32.xlu1 %v1058_v12  ;;  %592 = vadd.xlane.f32.xlu0 %v1060_v63  ;;  %v1531_v6 = vsub.f32 %v1403_v18, %v679_v0  ;;  %v1062_v14 = vpop.eup %1061 }
 0x2ab   :  { %1071 = vpow2.f32 %v724_v37 }
 0x2ac   :  { %1073 = vpow2.f32 %v566_v4  ;;  %v726_v15 = vmul.f32 1.442695, %v1531_v6 }
 0x2ad   :  { %v1064_v61 = vpop.eup %1063 }
 0x2ae   :  { %750 = vadd.xlane.f32.xlu1 %v1062_v14  ;;  %752 = vadd.xlane.f32.xlu0 %v1064_v61  ;;  %v1066_v10 = vpop.eup %1065  ;;  %1075 = vpow2.f32 %v726_v15 }
 0x2b1   :  { %v1068_v19 = vpop.eup %1067 }
 0x2b2   :  { %594 = vadd.xlane.f32.xlu1 %v1066_v10  ;;  %596 = vadd.xlane.f32.xlu0 %v1068_v19  ;;  %v1070_v23 = vpop.eup %1069 }
 0x2b5   :  { %v1072_v24 = vpop.eup %1071 }
 0x2b6   :  { %754 = vadd.xlane.f32.xlu1 %v1070_v23  ;;  %756 = vadd.xlane.f32.xlu0 %v1072_v24  ;;  %v1074_v27 = vpop.eup %1073 }
 0x2b8   :  { %v1076_v18 = vpop.eup %1075 }
 0x2ba   :  { %598 = vadd.xlane.f32.xlu1 %v1074_v27 }
 0x2be   :  { %758 = vadd.xlane.f32.xlu1 %v1076_v18 }
 0x306   :  { %v569_v2 = vpop.xlane.xlu0 %568 }
 0x307   :  { %1077 = vlog2.f32 %v569_v2 }
 0x30a   :  { %v729_v29 = vpop.xlane.xlu0 %728 }
 0x30b   :  { %1079 = vlog2.f32 %v729_v29 }
 0x30e   :  { %v573_v30 = vpop.xlane.xlu0 %572 }
 0x30f   :  { %v571_v33 = vpop.xlane.xlu1 %570  ;;  %1081 = vlog2.f32 %v573_v30 }
 0x310   :  { %1083 = vlog2.f32 %v571_v33 }
 0x311   :  { %v1078_v36 = vpop.eup %1077 }
 0x312   :  { %v601_v22 = vmul.f32 0.6931472, %v1078_v36  ;;  %v577_v39 = vpop.xlane.xlu0 %576 }
 0x313   :  { %v731_v3 = vpop.xlane.xlu1 %730 }
 0x314   :  { %v632_v26 = vsub.f32 %v1407_v20, %v601_v22  ;;  %1085 = vlog2.f32 %v731_v3 }
 0x315   :  { %v1080_v25 = vpop.eup %1079  ;;  %1087 = vlog2.f32 %v577_v39 }
 0x316   :  { %808 = vst [vmem:[%s1666_s4] sm:$0xff] %v632_v26  ;;  %v761_v43 = vmul.f32 0.6931472, %v1080_v25  ;;  %v733_v8 = vpop.xlane.xlu0 %732 }
 0x317   :  { %v575_v46 = vpop.xlane.xlu1 %574 }
 0x318   :  { %v792_v34 = vsub.f32 %v1411_v13, %v761_v43  ;;  %1089 = vlog2.f32 %v575_v46 }
 0x319   :  { %v1082_v32 = vpop.eup %1081  ;;  %1091 = vlog2.f32 %v733_v8 }
 0x31a   :  { %v1084_v54 = vpop.eup %1083  ;;  %809 = vst [vmem:[%s1666_s4 + $0x8] sm:$0xff] %v792_v34  ;;  %v605_v20 = vmul.f32 0.6931472, %v1082_v32  ;;  %v737_v12 = vpop.xlane.xlu0 %736 }
 0x31b   :  { %v603_v55 = vmul.f32 0.6931472, %v1084_v54  ;;  %v579_v58 = vpop.xlane.xlu1 %578 }
 0x31c   :  { %v634_v37 = vsub.f32 %v1418_v31, %v605_v20  ;;  %1093 = vlog2.f32 %v579_v58 }
 0x31d   :  { %v633_v63 = vsub.f32 %v1421_v16, %v603_v55  ;;  %1095 = vlog2.f32 %v737_v12 }
 0x31e   :  { %v1086_v0 = vpop.eup %1085  ;;  %812 = vst [vmem:[%s1666_s4 + $0x20] sm:$0xff] %v634_v37 }
 0x31f   :  { %v1088_v13 = vpop.eup %1087  ;;  %810 = vst [vmem:[%s1666_s4 + $0x10] sm:$0xff] %v633_v63  ;;  %v763_v4 = vmul.f32 0.6931472, %v1086_v0  ;;  %v735_v14 = vpop.xlane.xlu1 %734 }
 0x320   :  { %v581_v61 = vpop.xlane.xlu0 %580  ;;  %v609_v15 = vmul.f32 0.6931472, %v1088_v13  ;;  %1097 = vlog2.f32 %v735_v14 }
 0x321   :  { %v793_v31 = vsub.f32 %v1415_v17, %v763_v4  ;;  %1099 = vlog2.f32 %v581_v61 }
 0x322   :  { %v1090_v16 = vpop.eup %1089  ;;  %v636_v10 = vsub.f32 %v1430_v21, %v609_v15 }
 0x323   :  { %v1092_v19 = vpop.eup %1091  ;;  %811 = vst [vmem:[%s1666_s4 + $0x18] sm:$0xff] %v793_v31  ;;  %v607_v23 = vmul.f32 0.6931472, %v1090_v16  ;;  %v739_v24 = vpop.xlane.xlu1 %738 }
 0x324   :  { %v741_v27 = vpop.xlane.xlu0 %740  ;;  %816 = vst [vmem:[%s1666_s4 + $0x40] sm:$0xff] %v636_v10  ;;  %v765_v18 = vmul.f32 0.6931472, %v1092_v19  ;;  %1101 = vlog2.f32 %v739_v24 }
 0x325   :  { %v635_v17 = vsub.f32 %v1427_v40, %v607_v23  ;;  %1103 = vlog2.f32 %v741_v27 }
 0x326   :  { %v1094_v2 = vpop.eup %1093  ;;  %v794_v21 = vsub.f32 %v1438_v52, %v765_v18 }
 0x327   :  { %v1096_v29 = vpop.eup %1095  ;;  %814 = vst [vmem:[%s1666_s4 + $0x30] sm:$0xff] %v635_v17  ;;  %v611_v30 = vmul.f32 0.6931472, %v1094_v2  ;;  %v583_v33 = vpop.xlane.xlu1 %582 }
 0x328   :  { %v585_v36 = vpop.xlane.xlu0 %584  ;;  %813 = vst [vmem:[%s1666_s4 + $0x28] sm:$0xff] %v794_v21  ;;  %v769_v22 = vmul.f32 0.6931472, %v1096_v29  ;;  %1105 = vlog2.f32 %v583_v33 }
 0x329   :  { %v637_v40 = vsub.f32 %v1435_v48, %v611_v30  ;;  %1107 = vlog2.f32 %v585_v36 }
 0x32a   :  { %v1098_v3 = vpop.eup %1097  ;;  %v796_v52 = vsub.f32 %v1446_v62, %v769_v22 }
 0x32b   :  { %v1100_v39 = vpop.eup %1099  ;;  %818 = vst [vmem:[%s1666_s4 + $0x50] sm:$0xff] %v637_v40  ;;  %v767_v26 = vmul.f32 0.6931472, %v1098_v3  ;;  %v743_v25 = vpop.xlane.xlu1 %742 }
 0x32c   :  { %v745_v43 = vpop.xlane.xlu0 %744  ;;  %817 = vst [vmem:[%s1666_s4 + $0x48] sm:$0xff] %v796_v52  ;;  %v613_v46 = vmul.f32 0.6931472, %v1100_v39  ;;  %1109 = vlog2.f32 %v743_v25 }
 0x32d   :  { %v795_v48 = vsub.f32 %v1443_v59, %v767_v26  ;;  %1111 = vlog2.f32 %v745_v43 }
 0x32e   :  { %v1102_v8 = vpop.eup %1101  ;;  %v638_v62 = vsub.f32 %v1454_v41, %v613_v46 }
 0x32f   :  { %v1104_v34 = vpop.eup %1103  ;;  %815 = vst [vmem:[%s1666_s4 + $0x38] sm:$0xff] %v795_v48  ;;  %v771_v32 = vmul.f32 0.6931472, %v1102_v8  ;;  %v587_v54 = vpop.xlane.xlu1 %586 }
 0x330   :  { %v589_v20 = vpop.xlane.xlu0 %588  ;;  %820 = vst [vmem:[%s1666_s4 + $0x60] sm:$0xff] %v638_v62  ;;  %v773_v55 = vmul.f32 0.6931472, %v1104_v34  ;;  %1113 = vlog2.f32 %v587_v54 }
 0x331   :  { %v797_v59 = vsub.f32 %v1451_v7, %v771_v32  ;;  %1115 = vlog2.f32 %v589_v20 }
 0x332   :  { %v1106_v58 = vpop.eup %1105  ;;  %v798_v41 = vsub.f32 %v1462_v44, %v773_v55 }
 0x333   :  { %v1108_v12 = vpop.eup %1107  ;;  %819 = vst [vmem:[%s1666_s4 + $0x58] sm:$0xff] %v797_v59  ;;  %v615_v37 = vmul.f32 0.6931472, %v1106_v58  ;;  %v747_v63 = vpop.xlane.xlu1 %746 }
 0x334   :  { %v749_v0 = vpop.xlane.xlu0 %748  ;;  %821 = vst [vmem:[%s1666_s4 + $0x68] sm:$0xff] %v798_v41  ;;  %v617_v13 = vmul.f32 0.6931472, %v1108_v12  ;;  %1117 = vlog2.f32 %v747_v63 }
 0x335   :  { %v639_v7 = vsub.f32 %v1459_v28, %v615_v37  ;;  %1119 = vlog2.f32 %v749_v0 }
 0x336   :  { %v1110_v4 = vpop.eup %1109  ;;  %v640_v44 = vsub.f32 %v1470_v50, %v617_v13 }
 0x337   :  { %v1112_v14 = vpop.eup %1111  ;;  %822 = vst [vmem:[%s1666_s4 + $0x70] sm:$0xff] %v639_v7  ;;  %v775_v61 = vmul.f32 0.6931472, %v1110_v4  ;;  %v591_v15 = vpop.xlane.xlu1 %590 }
 0x338   :  { %v593_v31 = vpop.xlane.xlu0 %592  ;;  %824 = vst [vmem:[%s1666_s4 + $0x80] sm:$0xff] %v640_v44  ;;  %v777_v16 = vmul.f32 0.6931472, %v1112_v14  ;;  %1121 = vlog2.f32 %v591_v15 }
 0x339   :  { %v799_v28 = vsub.f32 %v1467_v38, %v775_v61  ;;  %1123 = vlog2.f32 %v593_v31 }
 0x33a   :  { %v1114_v10 = vpop.eup %1113  ;;  %v800_v50 = vsub.f32 %v1478_v53, %v777_v16 }
 0x33b   :  { %v1116_v19 = vpop.eup %1115  ;;  %823 = vst [vmem:[%s1666_s4 + $0x78] sm:$0xff] %v799_v28  ;;  %v619_v23 = vmul.f32 0.6931472, %v1114_v10  ;;  %v751_v24 = vpop.xlane.xlu1 %750 }
 0x33c   :  { %v753_v27 = vpop.xlane.xlu0 %752  ;;  %825 = vst [vmem:[%s1666_s4 + $0x88] sm:$0xff] %v800_v50  ;;  %v621_v18 = vmul.f32 0.6931472, %v1116_v19  ;;  %1125 = vlog2.f32 %v751_v24 }
 0x33d   :  { %v641_v38 = vsub.f32 %v1475_v47, %v619_v23  ;;  %1127 = vlog2.f32 %v753_v27 }
 0x33e   :  { %v1118_v17 = vpop.eup %1117  ;;  %v642_v53 = vsub.f32 %v1486_v57, %v621_v18 }
 0x33f   :  { %v1120_v2 = vpop.eup %1119  ;;  %826 = vst [vmem:[%s1666_s4 + $0x90] sm:$0xff] %v641_v38  ;;  %v779_v21 = vmul.f32 0.6931472, %v1118_v17  ;;  %v595_v29 = vpop.xlane.xlu1 %594 }
 0x340   :  { %v597_v30 = vpop.xlane.xlu0 %596  ;;  %828 = vst [vmem:[%s1666_s4 + $0xa0] sm:$0xff] %v642_v53  ;;  %v781_v33 = vmul.f32 0.6931472, %v1120_v2  ;;  %1129 = vlog2.f32 %v595_v29 }
 0x341   :  { %v801_v47 = vsub.f32 %v1483_v35, %v779_v21  ;;  %1131 = vlog2.f32 %v597_v30 }
 0x342   :  { %v1122_v36 = vpop.eup %1121  ;;  %v802_v57 = vsub.f32 %v1494_v60, %v781_v33 }
 0x343   :  { %v1124_v22 = vpop.eup %1123  ;;  %827 = vst [vmem:[%s1666_s4 + $0x98] sm:$0xff] %v801_v47  ;;  %v623_v40 = vmul.f32 0.6931472, %v1122_v36  ;;  %v755_v3 = vpop.xlane.xlu1 %754 }
 0x344   :  { %v757_v52 = vpop.xlane.xlu0 %756  ;;  %829 = vst [vmem:[%s1666_s4 + $0xa8] sm:$0xff] %v802_v57  ;;  %v625_v39 = vmul.f32 0.6931472, %v1124_v22  ;;  %1133 = vlog2.f32 %v755_v3 }
 0x345   :  { %v643_v35 = vsub.f32 %v1491_v42, %v623_v40  ;;  %1135 = vlog2.f32 %v757_v52 }
 0x346   :  { %v1126_v26 = vpop.eup %1125  ;;  %v644_v60 = vsub.f32 %v1502_v1, %v625_v39 }
 0x347   :  { %v1128_v25 = vpop.eup %1127  ;;  %830 = vst [vmem:[%s1666_s4 + $0xb0] sm:$0xff] %v643_v35  ;;  %v783_v43 = vmul.f32 0.6931472, %v1126_v26  ;;  %v599_v46 = vpop.xlane.xlu1 %598 }
 0x348   :  { %832 = vst [vmem:[%s1666_s4 + $0xc0] sm:$0xff] %v644_v60  ;;  %v785_v48 = vmul.f32 0.6931472, %v1128_v25  ;;  %1137 = vlog2.f32 %v599_v46 }
 0x349   :  { %v803_v8 = vsub.f32 %v1499_v45, %v783_v43 }
 0x34a   :  { %v1130_v42 = vpop.eup %1129  ;;  %v804_v62 = vsub.f32 %v1510_v5, %v785_v48 }
 0x34b   :  { %v1132_v34 = vpop.eup %1131  ;;  %831 = vst [vmem:[%s1666_s4 + $0xb8] sm:$0xff] %v803_v8  ;;  %v627_v1 = vmul.f32 0.6931472, %v1130_v42  ;;  %v759_v32 = vpop.xlane.xlu1 %758 }
 0x34c   :  { %833 = vst [vmem:[%s1666_s4 + $0xc8] sm:$0xff] %v804_v62  ;;  %v629_v54 = vmul.f32 0.6931472, %v1132_v34  ;;  %1139 = vlog2.f32 %v759_v32 }
 0x34d   :  { %v645_v20 = vsub.f32 %v1507_v49, %v627_v1 }
 0x34e   :  { %v1134_v55 = vpop.eup %1133  ;;  %v646_v45 = vsub.f32 %v1518_v9, %v629_v54 }
 0x34f   :  { %v1136_v59 = vpop.eup %1135  ;;  %834 = vst [vmem:[%s1666_s4 + $0xd0] sm:$0xff] %v645_v20  ;;  %v787_v5 = vmul.f32 0.6931472, %v1134_v55 }
 0x350   :  { %836 = vst [vmem:[%s1666_s4 + $0xe0] sm:$0xff] %v646_v45  ;;  %v789_v58 = vmul.f32 0.6931472, %v1136_v59 }
 0x351   :  { %v805_v41 = vsub.f32 %v1515_v51, %v787_v5 }
 0x352   :  { %v1138_v12 = vpop.eup %1137  ;;  %v806_v37 = vsub.f32 %v1523_v56, %v789_v58 }
 0x353   :  { %835 = vst [vmem:[%s1666_s4 + $0xd8] sm:$0xff] %v805_v41  ;;  %v631_v49 = vmul.f32 0.6931472, %v1138_v12 }
 0x354   :  { %837 = vst [vmem:[%s1666_s4 + $0xe8] sm:$0xff] %v806_v37 }
 0x355   :  { %v647_v9 = vsub.f32 %v1526_v11, %v631_v49 }
 0x356   :  { %v1140_v63 = vpop.eup %1139 }
 0x357   :  { %838 = vst [vmem:[%s1666_s4 + $0xf0] sm:$0xff] %v647_v9  ;;  %v791_v51 = vmul.f32 0.6931472, %v1140_v63 }
 0x359   :  { %v807_v0 = vsub.f32 %v1531_v6, %v791_v51 }
 0x35b   :  { %839 = vst [vmem:[%s1666_s4 + $0xf8] sm:$0xff] %v807_v0 }

</bundles_post_ra>
